<compile_context>
chip_gen: v7x
topology: tpu7x:2x2x1
jax: 0.10.0
libtpu: 0.0.40
codegen_flags: <defaults>
</compile_context>

<pallas_src>
import functools

import jax
import jax.numpy as jnp
from jax.experimental import pallas as pl
from jax.experimental.pallas import tpu as pltpu


def _round_up(x, m):
    return ((x + m - 1) // m) * m


def head_kernel(x_ref, w1_ref, b1_ref, w23_ref, b23_ref, o_ref):
    """out = relu(x @ W1 + b1) @ W23 + b23 for one (tile_m, *) row tile."""
    # Cast the MXU input to bf16 in-kernel (no-op when the wrapper already cast);
    # f32 accumulation via preferred_element_type; bias/ReLU on the f32 accumulator.
    x = x_ref[...].astype(w1_ref.dtype)
    h = jnp.dot(x, w1_ref[...], preferred_element_type=jnp.float32)
    h = jnp.maximum(h + b1_ref[...], 0.0)
    o = jnp.dot(h.astype(w23_ref.dtype), w23_ref[...], preferred_element_type=jnp.float32)
    o_ref[...] = (o + b23_ref[...]).astype(o_ref.dtype)


def fold_and_pad_params(params):
    """One-time parameter prep (hoisted out of the per-call jitted path).

    Folds MLP layer 2 with the head Linear (no nonlinearity between them) in f32,
    zero-pads every feature dim to a multiple of 128 (lane-dense), and casts the
    matmul weights to bf16 (native MXU input). Biases stay f32 (added on the f32
    accumulator). Returns (prepped_dict, logical_out_dim).
    """
    in_dim, hid_dim = params["w1"].shape
    out_dim = params["w3"].shape[1]
    in_p, hid_p, out_p = (_round_up(d, 128) for d in (in_dim, hid_dim, out_dim))

    w23 = params["w2"] @ params["w3"]                    # (hid, out), f32
    b23 = params["b2"] @ params["w3"] + params["b3"]     # (1,  out), f32

    prepped = {
        "w1": jnp.pad(params["w1"], ((0, in_p - in_dim), (0, hid_p - hid_dim))).astype(jnp.bfloat16),
        "b1": jnp.pad(params["b1"], ((0, 0), (0, hid_p - hid_dim))).astype(jnp.float32),
        "w23": jnp.pad(w23, ((0, hid_p - hid_dim), (0, out_p - out_dim))).astype(jnp.bfloat16),
        "b23": jnp.pad(b23, ((0, 0), (0, out_p - out_dim))).astype(jnp.float32),
    }
    return prepped, out_dim


def _pick_tile_m(n):
    # Bigger row tiles amortize the ~0.35 us per-grid-step pipeline overhead;
    # keep at least 2 tiles so the "parallel" axis can shard across v7x's 2 TCs.
    for tm in (1024, 512, 256):
        if n >= 2 * tm:
            return tm
    return 256


@functools.partial(jax.jit, static_argnames=("out_dim", "tile_m"))
def gnn_inductive_node_head(x, prepped, *, out_dim, tile_m=None):
    """x: (N, in_dim) float32/bfloat16.  prepped: output of fold_and_pad_params."""
    N, in_dim = x.shape
    in_p, hid_p = prepped["w1"].shape
    out_p = prepped["w23"].shape[1]
    assert in_dim <= in_p

    if tile_m is None:
        tile_m = _pick_tile_m(N)
    n_p = _round_up(N, tile_m)

    # Single-HBM-pass fast path: when no padding is needed the kernel reads x
    # directly (cast to bf16 on the VPU in-kernel). Otherwise pad rows/lanes
    # with zeros (mathematically inert) and cast to bf16 in the same pass so the
    # kernel reads half the bytes.
    if in_dim == in_p and N == n_p:
        xk = x
    else:
        xk = jnp.pad(x, ((0, n_p - N), (0, in_p - in_dim))).astype(jnp.bfloat16)

    grid = (n_p // tile_m,)

    # Weights/biases are small and constant across grid steps: full-array block
    # with a constant index map -> DMA'd once, never re-fetched.
    # NOTE: pipeline_mode=pl.Buffered(1) on these constant-index specs would
    # halve their footprint for very large hid_dim; left at the robust default
    # here since the folded weight set is tiny.
    def resident(shape):
        return pl.BlockSpec(shape, lambda i: (0, 0))

    # Explicit per-TensorCore VMEM budget: double-buffered x/out streams,
    # resident weights (pipeliner still allocates 2 buffers), plus the kernel's
    # compiler-managed intermediates (f32 h/relu tensors, bf16 cast of x, f32 o).
    x_b = xk.dtype.itemsize
    o_b = x.dtype.itemsize
    stream_bytes = 2 * tile_m * (in_p * x_b + out_p * o_b)
    weight_bytes = 2 * ((in_p * hid_p + hid_p * out_p) * 2 + (hid_p + out_p) * 4)
    interm_bytes = tile_m * (2 * hid_p * 4 + in_p * 2 + out_p * 4)
    vmem_needed = stream_bytes + weight_bytes + interm_bytes
    # Headroom; cap at 48 MiB -- above the 32 MiB default scoped limit (v5e/v6e
    # have 128 MiB physical VMEM) and still under v7x's 64 MiB-per-TC VMEM.
    vmem_limit = min(int(vmem_needed * 1.5) + (4 << 20), 48 << 20)

    out_padded = pl.pallas_call(
        head_kernel,
        out_shape=jax.ShapeDtypeStruct((n_p, out_p), x.dtype),
        grid_spec=pltpu.PrefetchScalarGridSpec(
            num_scalar_prefetch=0,
            grid=grid,
            in_specs=[
                pl.BlockSpec((tile_m, in_p), lambda i: (i, 0)),  # x row tile (streamed)
                resident((in_p, hid_p)),                         # W1
                resident((1, hid_p)),                            # b1
                resident((hid_p, out_p)),                        # W23 = W2 @ W3
                resident((1, out_p)),                            # b23 = b2 @ W3 + b3
            ],
            out_specs=pl.BlockSpec((tile_m, out_p), lambda i: (i, 0)),
        ),
        compiler_params=pltpu.CompilerParams(
            dimension_semantics=("parallel",),   # row tiles shard across v7x's 2 TCs
            vmem_limit_bytes=vmem_limit,
        ),
    )(xk, prepped["w1"], prepped["b1"], prepped["w23"], prepped["b23"])

    # TODO(synk): if the consumer tolerates the padded (n_p, out_p) buffer (or a
    # bf16 output), return it directly / fuse the consumer to avoid this extra
    # HBM pass over the write-amplified padded output.
    return out_padded[:N, :out_dim]


def init_params(key, in_dim, hid_dim, out_dim):
    """Deterministic synthetic init (uniform +-1/sqrt(fan_in)), weights stored as (in, out)."""
    ks = jax.random.split(key, 6)

    def lin(kw, kb, fan_in, fan_out):
        bound = 1.0 / jnp.sqrt(fan_in)
        w = jax.random.uniform(kw, (fan_in, fan_out), jnp.float32, -bound, bound)
        b = jax.random.uniform(kb, (1, fan_out), jnp.float32, -bound, bound)
        return w, b

    w1, b1 = lin(ks[0], ks[1], in_dim, hid_dim)
    w2, b2 = lin(ks[2], ks[3], hid_dim, hid_dim)
    w3, b3 = lin(ks[4], ks[5], hid_dim, out_dim)
    return {"w1": w1, "b1": b1, "w2": w2, "b2": b2, "w3": w3, "b3": b3}


def reference_forward_f32(x, p):
    """Original 3-layer module in plain f32 (semantic reference, no folding)."""
    h = jnp.maximum(x @ p["w1"] + p["b1"], 0.0)
    h = h @ p["w2"] + p["b2"]
    return h @ p["w3"] + p["b3"]


def reference_forward_kernel_numerics(x, p):
    """Pure-JAX mirror of the kernel numerics (f32 fold, bf16 MXU inputs, f32 accumulate)."""
    bf = lambda a: a.astype(jnp.bfloat16).astype(jnp.float32)
    hp = jax.lax.Precision.HIGHEST
    w23 = p["w2"] @ p["w3"]
    b23 = p["b2"] @ p["w3"] + p["b3"]
    h = jnp.maximum(jnp.dot(bf(x), bf(p["w1"]), precision=hp) + p["b1"], 0.0)
    return jnp.dot(bf(h), bf(w23), precision=hp) + b23


if __name__ == "__main__":
    key = jax.random.PRNGKey(0)
    k_x, k_p, k_x2 = jax.random.split(key, 3)

    # Main case: N deliberately NOT a multiple of the tile and in/out dims not
    # multiples of 128 (exercises the padding paths).
    N, in_dim, hid_dim, out_dim = 1000, 300, 256, 10
    x = jax.random.normal(k_x, (N, in_dim), jnp.float32)
    params = init_params(k_p, in_dim, hid_dim, out_dim)

    # One-time parameter prep (fold + pad + cast), outside the per-call path.
    prepped, out_dim_logical = fold_and_pad_params(params)

    out = gnn_inductive_node_head(x, prepped, out_dim=out_dim_logical)
    out = jax.block_until_ready(out)
    assert out.shape == (N, out_dim)
    assert jnp.allclose(out, reference_forward_kernel_numerics(x, params),
                        atol=1e-2, rtol=1e-2), "mismatch vs kernel-numerics reference"
    assert jnp.allclose(out, reference_forward_f32(x, params),
                        atol=5e-2, rtol=5e-2), "mismatch vs f32 module reference (fold)"

    # Aligned case: exercises the zero-copy x path (no wrapper pad/cast of x).
    N2, in2 = 512, 256
    x2 = jax.random.normal(k_x2, (N2, in2), jnp.float32)
    params2 = init_params(jax.random.PRNGKey(1), in2, hid_dim, out_dim)
    prepped2, out_dim2 = fold_and_pad_params(params2)
    out2 = jax.block_until_ready(gnn_inductive_node_head(x2, prepped2, out_dim=out_dim2))
    assert out2.shape == (N2, out_dim)
    assert jnp.allclose(out2, reference_forward_kernel_numerics(x2, params2),
                        atol=1e-2, rtol=1e-2), "mismatch vs reference (aligned path)"

    print("KERNEL_OK")
</pallas_src>

<mosaic_0001>
module attributes {stable_mosaic.version = 11 : i64} {
  func.func @head_kernel(%arg0: i32, %arg1: memref<256x384xbf16, #tpu.memory_space<vmem>>, %arg2: memref<384x256xbf16, #tpu.memory_space<vmem>>, %arg3: memref<1x256xf32, #tpu.memory_space<vmem>>, %arg4: memref<256x128xbf16, #tpu.memory_space<vmem>>, %arg5: memref<1x128xf32, #tpu.memory_space<vmem>>, %arg6: memref<256x128xf32, #tpu.memory_space<vmem>>) attributes {dimension_semantics = [#tpu.dimension_semantics<parallel>], iteration_bounds = array<i64: 4>, scalar_prefetch = 0 : i64, scratch_operands = 0 : i64, tpu.core_type = #tpu.core_type<tc>, window_params = [{transform_indices = @transform_0, window_bounds = array<i64: 256, 384>}, {pipeline_mode = #tpu.pipeline_mode<synchronous>, transform_indices = @transform_1, window_bounds = array<i64: 384, 256>}, {pipeline_mode = #tpu.pipeline_mode<synchronous>, transform_indices = @transform_2, window_bounds = array<i64: 1, 256>}, {pipeline_mode = #tpu.pipeline_mode<synchronous>, transform_indices = @transform_3, window_bounds = array<i64: 256, 128>}, {pipeline_mode = #tpu.pipeline_mode<synchronous>, transform_indices = @transform_4, window_bounds = array<i64: 1, 128>}, {transform_indices = @transform_5, window_bounds = array<i64: 256, 128>}]} {
    %c0 = arith.constant 0 : index
    %c0_0 = arith.constant 0 : index
    %0 = vector.load %arg1[%c0, %c0_0] : memref<256x384xbf16, #tpu.memory_space<vmem>>, vector<256x384xbf16>
    %c0_1 = arith.constant 0 : index
    %c0_2 = arith.constant 0 : index
    %1 = vector.load %arg2[%c0_1, %c0_2] : memref<384x256xbf16, #tpu.memory_space<vmem>>, vector<384x256xbf16>
    %cst = arith.constant dense<0.000000e+00> : vector<256x256xf32>
    %2 = tpu.matmul %0, %1, %cst {dimension_numbers = #tpu.dot_dimension_numbers<[1], [0], [0], [1], [0, 0, 1, 1], [], []>} : vector<256x384xbf16>, vector<384x256xbf16>, vector<256x256xf32> -> vector<256x256xf32>
    %c0_3 = arith.constant 0 : index
    %c0_4 = arith.constant 0 : index
    %3 = vector.load %arg3[%c0_3, %c0_4] : memref<1x256xf32, #tpu.memory_space<vmem>>, vector<1x256xf32>
    %4 = vector.broadcast %3 : vector<1x256xf32> to vector<256x256xf32>
    %5 = arith.addf %2, %4 : vector<256x256xf32>
    %cst_5 = arith.constant 0.000000e+00 : f32
    %6 = vector.broadcast %cst_5 : f32 to vector<256x256xf32>
    %7 = arith.maximumf %5, %6 : vector<256x256xf32>
    %8 = arith.truncf %7 : vector<256x256xf32> to vector<256x256xbf16>
    %c0_6 = arith.constant 0 : index
    %c0_7 = arith.constant 0 : index
    %9 = vector.load %arg4[%c0_6, %c0_7] : memref<256x128xbf16, #tpu.memory_space<vmem>>, vector<256x128xbf16>
    %cst_8 = arith.constant dense<0.000000e+00> : vector<256x128xf32>
    %10 = tpu.matmul %8, %9, %cst_8 {dimension_numbers = #tpu.dot_dimension_numbers<[1], [0], [0], [1], [0, 0, 1, 1], [], []>} : vector<256x256xbf16>, vector<256x128xbf16>, vector<256x128xf32> -> vector<256x128xf32>
    %c0_9 = arith.constant 0 : index
    %c0_10 = arith.constant 0 : index
    %11 = vector.load %arg5[%c0_9, %c0_10] : memref<1x128xf32, #tpu.memory_space<vmem>>, vector<1x128xf32>
    %12 = vector.broadcast %11 : vector<1x128xf32> to vector<256x128xf32>
    %13 = arith.addf %10, %12 : vector<256x128xf32>
    %c0_11 = arith.constant 0 : index
    %c0_12 = arith.constant 0 : index
    %14 = vector.load %arg6[%c0_11, %c0_12] : memref<256x128xf32, #tpu.memory_space<vmem>>, vector<256x128xf32>
    tpu.vector_store %arg6[%c0_11, %c0_12], %13 {strides = array<i32>} : memref<256x128xf32, #tpu.memory_space<vmem>>, vector<256x128xf32>,
    return
  }
  func.func @transform_0(%arg0: i32) -> (i32, i32) {
    %c0_i32 = arith.constant 0 : i32
    %c0_i32_0 = arith.constant 0 : i32
    return %arg0, %c0_i32 : i32, i32
  }
  func.func @transform_1(%arg0: i32) -> (i32, i32) {
    %c0_i32 = arith.constant 0 : i32
    %c0_i32_0 = arith.constant 0 : i32
    %c0_i32_1 = arith.constant 0 : i32
    return %c0_i32, %c0_i32_0 : i32, i32
  }
  func.func @transform_2(%arg0: i32) -> (i32, i32) {
    %c0_i32 = arith.constant 0 : i32
    %c0_i32_0 = arith.constant 0 : i32
    %c0_i32_1 = arith.constant 0 : i32
    return %c0_i32, %c0_i32_0 : i32, i32
  }
  func.func @transform_3(%arg0: i32) -> (i32, i32) {
    %c0_i32 = arith.constant 0 : i32
    %c0_i32_0 = arith.constant 0 : i32
    %c0_i32_1 = arith.constant 0 : i32
    return %c0_i32, %c0_i32_0 : i32, i32
  }
  func.func @transform_4(%arg0: i32) -> (i32, i32) {
    %c0_i32 = arith.constant 0 : i32
    %c0_i32_0 = arith.constant 0 : i32
    %c0_i32_1 = arith.constant 0 : i32
    return %c0_i32, %c0_i32_0 : i32, i32
  }
  func.func @transform_5(%arg0: i32) -> (i32, i32) {
    %c0_i32 = arith.constant 0 : i32
    %c0_i32_0 = arith.constant 0 : i32
    return %arg0, %c0_i32 : i32, i32
  }
}

</mosaic_0001>

<bundles_post_ra>
// kernel: gnn_inductive_node_head.1
= control target key start
LH: loop header
LB: loop body
LE: loop exit
PB: predicated region body
PF: predicated region fallthrough
CT: control target
= control target key end

     0   :  { %s2299_s18 = smov 0   ;;  %s2952_s0 = inlined_call_operand.vmem [shape: bf16[1024,384], index: 0, kind: input, shape index: {}]   ;;  %s2953_s1 = inlined_call_operand.vmem [shape: bf16[384,256], index: 1, kind: input, shape index: {}]   ;;  %s2954_s2 = inlined_call_operand.vmem [shape: f32[1,256], index: 2, kind: input, shape index: {}]   ;;  %s2955_s3 = inlined_call_operand.vmem [shape: bf16[256,128], index: 3, kind: input, shape index: {}]   ;;  %s2956_s4 = inlined_call_operand.vmem [shape: f32[1,128], index: 4, kind: input, shape index: {}]   ;;  %s2957_s5 = inlined_call_operand.vmem [shape: f32[1024,128], index: 5, kind: output, shape index: {}]  }
   0x1 LB: > { %s1718_s19 = sadd.s32 4294967295, %s2266_s18   ;;  %p1722_p0 = scmp.ge.s32.totalorder %s2266_s18, 1  ;;  %s2266_s18 = sphi %s2299_s18, %s15_s18  }
   0x2   : > { %p189_p1 = scmp.lt.s32.totalorder %s2266_s18, 5 }
   0x4   : > { %p190_p2 = pnand %p1722_p0, %p189_p1 }
   0x5   : > { %v2108_v0 = vld [vmem:[%s2953_s1 + $0x4] ss:$8 sps:$4 sm:$0xff] (!%p190_p2)   ;;  %v2110_v1 = vld [vmem:[%s2953_s1] ss:$8 sps:$4 sm:$0xff] (!%p190_p2)   ;;  %v2268_v2 = vmov (!%p190_p2), 0   ;;  %s1723_s30 = sshll.u32 (!%p190_p2), %s1718_s19, 5 }
   0x6   : > { %193 = sbr.rel (%p190_p2) target bundleno = 760 (0x2f8), region = 40  ;;  %1137 = vmatprep.mubr.bf16.mxu1 (!%p190_p2), %v2268_v2  ;;  %852 = vmatprep.subr.bf16.mxu0 (!%p190_p2), %v2108_v0  ;;  %v2111_v3 = vld [vmem:[%s2953_s1 + $0x14] ss:$8 sps:$4 sm:$0xff] (!%p190_p2)   ;;  %v2113_v4 = vld [vmem:[%s2953_s1 + $0x10] ss:$8 sps:$4 sm:$0xff] (!%p190_p2)   ;;  %p219_p3 = scmp.lt.s32.totalorder (!%p190_p2), %s1723_s30, 127 }
   0x7   : > { %853 = vmatpush1.bf16.msra.mxu0 (!%p190_p2), %v2110_v1  ;;  %v2114_v5 = vld [vmem:[%s2953_s1 + $0x24] ss:$8 sps:$4 sm:$0xff] (!%p190_p2)   ;;  %v2116_v6 = vld [vmem:[%s2953_s1 + $0x20] ss:$8 sps:$4 sm:$0xff] (!%p190_p2)   ;;  %v2117_v7 = vld [vmem:[%s2953_s1 + $0x34] ss:$8 sps:$4 sm:$0xff] (!%p190_p2)  }
   0x8   : > { %854 = vmatprep.subr.bf16.mxu0 (!%p190_p2), %v2111_v3  ;;  %v2119_v8 = vld [vmem:[%s2953_s1 + $0x30] ss:$8 sps:$4 sm:$0xff] (!%p190_p2)   ;;  %v2120_v9 = vld [vmem:[%s2953_s1 + $0x44] ss:$8 sps:$4 sm:$0xff] (!%p190_p2)   ;;  %v2122_v10 = vld [vmem:[%s2953_s1 + $0x40] ss:$8 sps:$4 sm:$0xff] (!%p190_p2)  }
   0x9   : > { %v2123_v11 = vld [vmem:[%s2953_s1 + $0x54] ss:$8 sps:$4 sm:$0xff] (!%p190_p2)   ;;  %v2125_v12 = vld [vmem:[%s2953_s1 + $0x50] ss:$8 sps:$4 sm:$0xff] (!%p190_p2)   ;;  %v2126_v13 = vld [vmem:[%s2953_s1 + $0x64] ss:$8 sps:$4 sm:$0xff] (!%p190_p2)  }
   0xa   : > { %v2128_v14 = vld [vmem:[%s2953_s1 + $0x60] ss:$8 sps:$4 sm:$0xff] (!%p190_p2)   ;;  %v2367_v17 = vld [vmem:[%s2953_s1 + $0x104] ss:$8 sps:$4 sm:$0xff] (!%p190_p2)   ;;  %v2129_v18 = vld [vmem:[%s2953_s1 + $0x74] ss:$8 sps:$4 sm:$0xff] (!%p190_p2)  }
   0xb   : > { %855 = vmatpush1.bf16.msra.mxu0 (!%p190_p2), %v2113_v4  ;;  %v2362_v16 = vld [vmem:[%s2953_s1 + $0x100] ss:$8 sps:$4 sm:$0xff] (!%p190_p2)   ;;  %1954 = vmatprep.subr.bf16.mxu1 (!%p190_p2), %v2367_v17  ;;  %v2131_v19 = vld [vmem:[%s2953_s1 + $0x70] ss:$8 sps:$4 sm:$0xff] (!%p190_p2)   ;;  %v2385_v21 = vld [vmem:[%s2953_s1 + $0x114] ss:$8 sps:$4 sm:$0xff] (!%p190_p2)  }
   0xc   : > { %856 = vmatprep.subr.bf16.mxu0 (!%p190_p2), %v2114_v5  ;;  %1962 = vmatpush1.bf16.msra.mxu1 (!%p190_p2), %v2362_v16  ;;  %v2380_v20 = vld [vmem:[%s2953_s1 + $0x110] ss:$8 sps:$4 sm:$0xff] (!%p190_p2)   ;;  %v2132_v22 = vld [vmem:[%s2953_s1 + $0x84] ss:$8 sps:$4 sm:$0xff] (!%p190_p2)   ;;  %v2134_v23 = vld [vmem:[%s2953_s1 + $0x80] ss:$8 sps:$4 sm:$0xff] (!%p190_p2)  }
   0xd   : > { %s2959_s30 = smov (!%p219_p3, %s1723_s30), 127  ;;  %1955 = vmatprep.subr.bf16.mxu1 %v2385_v21  ;;  %v2398_v24 = vld [vmem:[%s2953_s1 + $0x124] ss:$8 sps:$4 sm:$0xff]   ;;  %v2403_v25 = vld [vmem:[%s2953_s1 + $0x120] ss:$8 sps:$4 sm:$0xff]  }
   0xe   : > { %s2098_s16 = smul.u32 12, %s2959_s30  ;;  %v2408_v26 = vld [vmem:[%s2953_s1 + $0x134] ss:$8 sps:$4 sm:$0xff]   ;;  %v2137_v28 = vld [vmem:[%s2953_s1 + $0x90] ss:$8 sps:$4 sm:$0xff]   ;;  %s1726_s19 = sshll.u32 %s2959_s30, 3 }
   0xf   : > { %857 = vmatpush1.bf16.msra.mxu0 %v2116_v6  ;;  %v2135_v27 = vld [vmem:[%s2953_s1 + $0x94] ss:$8 sps:$4 sm:$0xff]   ;;  %v2421_v29 = vld [vmem:[%s2953_s1 + $0x130] ss:$8 sps:$4 sm:$0xff]   ;;  %v2427_v30 = vld [vmem:[%s2953_s1 + $0x144] ss:$8 sps:$4 sm:$0xff]  }
  0x10   : > { %858 = vmatprep.subr.bf16.mxu0 %v2117_v7  ;;  %s2350_s24 = scalar_lea.vmem %s2952_s0, %s2098_s16  ;;  %1963 = vmatpush1.bf16.msra.mxu1 %v2380_v20  ;;  %v2138_v31 = vld [vmem:[%s2953_s1 + $0xa4] ss:$8 sps:$4 sm:$0xff]   ;;  %v2140_v32 = vld [vmem:[%s2953_s1 + $0xa0] ss:$8 sps:$4 sm:$0xff]   ;;  %v2445_v34 = vld [vmem:[%s2953_s1 + $0x154] ss:$8 sps:$4 sm:$0xff]  }
  0x11   : > { %v2158_v15 = vld [vmem:[%s2350_s24 + $0x4] ss:$12 sps:$4 sm:$0xff]   ;;  %1956 = vmatprep.subr.bf16.mxu1 %v2398_v24  ;;  %v2439_v33 = vld [vmem:[%s2953_s1 + $0x140] ss:$8 sps:$4 sm:$0xff]   ;;  %v2141_v35 = vld [vmem:[%s2953_s1 + $0xb4] ss:$8 sps:$4 sm:$0xff]  }
  0x12   : > { %884 = vmatprep.mubr.bf16.mxu0 %v2158_v15  ;;  %v2454_v36 = vld [vmem:[%s2953_s1 + $0x150] ss:$8 sps:$4 sm:$0xff]   ;;  %v2463_v38 = vld [vmem:[%s2953_s1 + $0x164] ss:$8 sps:$4 sm:$0xff]   ;;  %v2146_v40 = vld [vmem:[%s2953_s1 + $0xc0] ss:$8 sps:$4 sm:$0xff]  }
  0x13   : > { %859 = vmatpush1.bf16.msra.mxu0 %v2119_v8  ;;  %v2143_v37 = vld [vmem:[%s2953_s1 + $0xb0] ss:$8 sps:$4 sm:$0xff]   ;;  %v2144_v39 = vld [vmem:[%s2953_s1 + $0xc4] ss:$8 sps:$4 sm:$0xff]   ;;  %v2475_v41 = vld [vmem:[%s2953_s1 + $0x160] ss:$8 sps:$4 sm:$0xff]  }
  0x14   : > { %860 = vmatprep.subr.bf16.mxu0 %v2120_v9  ;;  %1964 = vmatpush1.bf16.msra.mxu1 %v2403_v25  ;;  %v2481_v42 = vld [vmem:[%s2953_s1 + $0x174] ss:$8 sps:$4 sm:$0xff]   ;;  %v2490_v44 = vld [vmem:[%s2953_s1 + $0x170] ss:$8 sps:$4 sm:$0xff]   ;;  %v2150_v46 = vld [vmem:[%s2953_s1 + $0xe4] ss:$8 sps:$4 sm:$0xff]  }
  0x15   : > { %1957 = vmatprep.subr.bf16.mxu1 %v2408_v26  ;;  %v2147_v43 = vld [vmem:[%s2953_s1 + $0xd4] ss:$8 sps:$4 sm:$0xff]   ;;  %v2149_v45 = vld [vmem:[%s2953_s1 + $0xd0] ss:$8 sps:$4 sm:$0xff]   ;;  %v2152_v48 = vld [vmem:[%s2953_s1 + $0xe0] ss:$8 sps:$4 sm:$0xff]  }
  0x16   : > { %v2201_v47 = vld [vmem:[%s2350_s24 + $0x98] ss:$12 sps:$4 sm:$0xff]   ;;  %v2153_v49 = vld [vmem:[%s2953_s1 + $0xf4] ss:$8 sps:$4 sm:$0xff]   ;;  %v2156_v52 = vld [vmem:[%s2350_s24] ss:$12 sps:$4 sm:$0xff]  }
  0x17   : > { %861 = vmatpush1.bf16.msra.mxu0 %v2122_v10  ;;  %v2155_v50 = vld [vmem:[%s2953_s1 + $0xf0] ss:$8 sps:$4 sm:$0xff]   ;;  %v2162_v53 = vld [vmem:[%s2350_s24 + $0x1c] ss:$12 sps:$4 sm:$0xff]   ;;  %v2165_v56 = vld [vmem:[%s2350_s24 + $0x34] ss:$12 sps:$4 sm:$0xff]  }
  0x18   : > { %862 = vmatprep.subr.bf16.mxu0 %v2123_v11  ;;  %1965 = vmatpush1.bf16.msra.mxu1 %v2421_v29  ;;  %v2205_v51 = vld [vmem:[%s2350_s24 + $0xb0] ss:$12 sps:$4 sm:$0xff]   ;;  %v2209_v54 = vld [vmem:[%s2350_s24 + $0xc8] ss:$12 sps:$4 sm:$0xff]   ;;  %v2164_v55 = vld [vmem:[%s2350_s24 + $0x18] ss:$12 sps:$4 sm:$0xff]  }
  0x19   : > { %1958 = vmatprep.subr.bf16.mxu1 %v2427_v30  ;;  %v2213_v57 = vld [vmem:[%s2350_s24 + $0xe0] ss:$12 sps:$4 sm:$0xff]   ;;  %v2167_v58 = vld [vmem:[%s2350_s24 + $0x30] ss:$12 sps:$4 sm:$0xff]   ;;  %v2217_v60 = vld [vmem:[%s2350_s24 + $0xf8] ss:$12 sps:$4 sm:$0xff]  }
  0x1a   : > { %v2171_v59 = vld [vmem:[%s2350_s24 + $0x4c] ss:$12 sps:$4 sm:$0xff]   ;;  %v2173_v61 = vld [vmem:[%s2350_s24 + $0x48] ss:$12 sps:$4 sm:$0xff]   ;;  %v2179_v62 = vld [vmem:[%s2350_s24 + $0x64] ss:$12 sps:$4 sm:$0xff]  }
  0x1b   : > { %863 = vmatpush1.bf16.msra.mxu0 %v2125_v12  ;;  %v2221_v63 = vld [vmem:[%s2350_s24 + $0x110] ss:$12 sps:$4 sm:$0xff]   ;;  %v2182_v0 = vld [vmem:[%s2350_s24 + $0x60] ss:$12 sps:$4 sm:$0xff]   ;;  %v2225_v3 = vld [vmem:[%s2350_s24 + $0x128] ss:$12 sps:$4 sm:$0xff]  }
  0x1c   : > { %864 = vmatprep.subr.bf16.mxu0 %v2126_v13  ;;  %1966 = vmatpush1.bf16.msra.mxu1 %v2439_v33  ;;  %v2188_v1 = vld [vmem:[%s2350_s24 + $0x7c] ss:$12 sps:$4 sm:$0xff]   ;;  %v2191_v4 = vld [vmem:[%s2350_s24 + $0x78] ss:$12 sps:$4 sm:$0xff]   ;;  %v2197_v5 = vld [vmem:[%s2350_s24 + $0x94] ss:$12 sps:$4 sm:$0xff]  }
  0x1d   : > { %1959 = vmatprep.subr.bf16.mxu1 %v2445_v34  ;;  %v2229_v6 = vld [vmem:[%s2350_s24 + $0x140] ss:$12 sps:$4 sm:$0xff]   ;;  %v2200_v7 = vld [vmem:[%s2350_s24 + $0x90] ss:$12 sps:$4 sm:$0xff]   ;;  %v2233_v9 = vld [vmem:[%s2350_s24 + $0x158] ss:$12 sps:$4 sm:$0xff]  }
  0x1e   : > { %v2202_v8 = vld [vmem:[%s2350_s24 + $0xac] ss:$12 sps:$4 sm:$0xff]   ;;  %v2204_v10 = vld [vmem:[%s2350_s24 + $0xa8] ss:$12 sps:$4 sm:$0xff]   ;;  %v2206_v11 = vld [vmem:[%s2350_s24 + $0xc4] ss:$12 sps:$4 sm:$0xff]  }
  0x1f   : > { %865 = vmatpush1.bf16.msra.mxu0 %v2128_v14  ;;  %v2237_v12 = vld [vmem:[%s2350_s24 + $0x170] ss:$12 sps:$4 sm:$0xff]   ;;  %v2208_v13 = vld [vmem:[%s2350_s24 + $0xc0] ss:$12 sps:$4 sm:$0xff]   ;;  %v2212_v15 = vld [vmem:[%s2350_s24 + $0xd8] ss:$12 sps:$4 sm:$0xff]  }
  0x20   : > { %866 = vmatprep.subr.bf16.mxu0 %v2129_v18  ;;  %1967 = vmatpush1.bf16.msra.mxu1 %v2454_v36  ;;  %v2210_v14 = vld [vmem:[%s2350_s24 + $0xdc] ss:$12 sps:$4 sm:$0xff]   ;;  %v2218_v18 = vld [vmem:[%s2350_s24 + $0x10c] ss:$12 sps:$4 sm:$0xff]  }
  0x21   : > { %1960 = vmatprep.subr.bf16.mxu1 %v2463_v38 }
  0x23   : > { %867 = vmatpush1.bf16.msra.mxu0 %v2131_v19  ;;  %v2220_v19 = vld [vmem:[%s2350_s24 + $0x108] ss:$12 sps:$4 sm:$0xff]  }
  0x24   : > { %868 = vmatprep.subr.bf16.mxu0 %v2132_v22  ;;  %1968 = vmatpush1.bf16.msra.mxu1 %v2475_v41  ;;  %v2226_v22 = vld [vmem:[%s2350_s24 + $0x13c] ss:$12 sps:$4 sm:$0xff]  }
  0x25   : > { %1961 = vmatprep.subr.bf16.mxu1 %v2481_v42 }
  0x27   : > { %869 = vmatpush1.bf16.msra.mxu0 %v2134_v23  ;;  %v2228_v23 = vld [vmem:[%s2350_s24 + $0x138] ss:$12 sps:$4 sm:$0xff]  }
  0x28   : > { %870 = vmatprep.subr.bf16.mxu0 %v2135_v27  ;;  %1969 = vmatpush1.bf16.msra.mxu1 %v2490_v44  ;;  %v2236_v27 = vld [vmem:[%s2350_s24 + $0x168] ss:$12 sps:$4 sm:$0xff]  }
  0x2b   : > { %871 = vmatpush1.bf16.msra.mxu0 %v2137_v28  ;;  %1138 = vmatmul.mubr.bf16.vlgmr.msra.gmra.mrb[0].mxu1 %v2201_v47  ;;  %v2238_v28 = vld [vmem:[%s2350_s24 + $0x8] ss:$12 sps:$4 sm:$0xff]  }
  0x2c   : > { %872 = vmatprep.subr.bf16.mxu0 %v2138_v31  ;;  %1147 = vmatprep.mubr.bf16.mxu1 %v2268_v2  ;;  %v2244_v31 = vld [vmem:[%s2955_s3 + $0x40] sm:$0xff]  }
  0x2d   : > { %1842 = vmatprep.subr.bf16.mxu1 %v2244_v31 }
  0x2f   : > { %873 = vmatpush1.bf16.msra.mxu0 %v2140_v32  ;;  %v2241_v32 = vld [vmem:[%s2350_s24 + $0x50] ss:$12 sps:$4 sm:$0xff]  }
  0x30   : > { %874 = vmatprep.subr.bf16.mxu0 %v2141_v35  ;;  %v2246_v35 = vld [vmem:[%s2955_s3 + $0x48] sm:$0xff]  }
  0x33   : > { %875 = vmatpush1.bf16.msra.mxu0 %v2143_v37  ;;  %1148 = vmatmul.mubr.bf16.gmra.mrb[4].mxu1 %v2205_v51  ;;  %v2243_v37 = vld [vmem:[%s2350_s24 + $0x80] ss:$12 sps:$4 sm:$0xff]  }
  0x34   : > { %876 = vmatprep.subr.bf16.mxu0 %v2144_v39  ;;  %1157 = vmatprep.mubr.bf16.mxu1 %v2268_v2  ;;  %v2249_v39 = vld [vmem:[%s2955_s3 + $0x10] sm:$0xff]  }
  0x37   : > { %877 = vmatpush1.bf16.msra.mxu0 %v2146_v40  ;;  %v2250_v40 = vld [vmem:[%s2955_s3 + $0x58] sm:$0xff]  }
  0x38   : > { %878 = vmatprep.subr.bf16.mxu0 %v2147_v43  ;;  %v2254_v43 = vld [vmem:[%s2955_s3 + $0x68] sm:$0xff]  }
  0x3b   : > { %879 = vmatpush1.bf16.msra.mxu0 %v2149_v45  ;;  %1158 = vmatmul.mubr.bf16.gmra.mrb[8].mxu1 %v2209_v54 }
  0x3c   : > { %880 = vmatprep.subr.bf16.mxu0 %v2150_v46  ;;  %1167 = vmatprep.mubr.bf16.mxu1 %v2268_v2 }
  0x3f   : > { %881 = vmatpush1.bf16.msra.mxu0 %v2152_v48 }
  0x40   : > { %882 = vmatprep.subr.bf16.mxu0 %v2153_v49  ;;  %v2256_v49 = vld [vmem:[%s2955_s3 + $0x70] sm:$0xff]  }
  0x43   : > { %883 = vmatpush1.bf16.msra.mxu0 %v2155_v50  ;;  %1168 = vmatmul.mubr.bf16.gmra.mrb[12].mxu1 %v2213_v57  ;;  %v2257_v50 = vld [vmem:[%s2955_s3 + $0x30] sm:$0xff]  }
  0x44   : > { %1045 = vmatprep.subr.bf16.mxu0 %v2367_v17  ;;  %1177 = vmatprep.mubr.bf16.mxu1 %v2268_v2  ;;  %v2216_v17 = vld [vmem:[%s2350_s24 + $0xf0] ss:$12 sps:$4 sm:$0xff]  }
  0x46   : > { %885 = vmatmul.mubr.bf16.vlgmr.msra.gmra.mrb[0].mxu0 %v2156_v52 }
  0x47   : > { %1046 = vmatpush1.bf16.msra.mxu0 %v2362_v16  ;;  %894 = vmatprep.mubr.bf16.mxu0 %v2162_v53  ;;  %v2214_v16 = vld [vmem:[%s2350_s24 + $0xf4] ss:$12 sps:$4 sm:$0xff]  }
  0x48   : > { %1047 = vmatprep.subr.bf16.mxu0 %v2385_v21  ;;  %v2224_v21 = vld [vmem:[%s2350_s24 + $0x120] ss:$12 sps:$4 sm:$0xff]  }
  0x4b   : > { %1048 = vmatpush1.bf16.msra.mxu0 %v2380_v20  ;;  %1178 = vmatmul.mubr.bf16.gmra.mrb[16].mxu1 %v2217_v60  ;;  %v2222_v20 = vld [vmem:[%s2350_s24 + $0x124] ss:$12 sps:$4 sm:$0xff]  }
  0x4c   : > { %1049 = vmatprep.subr.bf16.mxu0 %v2398_v24  ;;  %1187 = vmatprep.mubr.bf16.mxu1 %v2268_v2  ;;  %v2230_v24 = vld [vmem:[%s2350_s24 + $0x154] ss:$12 sps:$4 sm:$0xff]  }
  0x4e   : > { %895 = vmatmul.mubr.bf16.gmra.mrb[4].mxu0 %v2164_v55  ;;  %v2258_v55 = vld [vmem:[%s2955_s3 + $0x78] sm:$0xff]  }
  0x4f   : > { %904 = vmatprep.mubr.bf16.mxu0 %v2165_v56  ;;  %1050 = vmatpush1.bf16.msra.mxu0 %v2403_v25  ;;  %v2232_v25 = vld [vmem:[%s2350_s24 + $0x150] ss:$12 sps:$4 sm:$0xff]  }
  0x50   : > { %1051 = vmatprep.subr.bf16.mxu0 %v2408_v26  ;;  %v2234_v26 = vld [vmem:[%s2350_s24 + $0x16c] ss:$12 sps:$4 sm:$0xff]  }
  0x51   : > { %v2259_v56 = vld [vmem:[%s2955_s3 + $0x38] sm:$0xff]  }
  0x53   : > { %1052 = vmatpush1.bf16.msra.mxu0 %v2421_v29  ;;  %1188 = vmatmul.mubr.bf16.gmra.mrb[20].mxu1 %v2221_v63  ;;  %v2239_v29 = vld [vmem:[%s2350_s24 + $0x20] ss:$12 sps:$4 sm:$0xff]  }
  0x54   : > { %1053 = vmatprep.subr.bf16.mxu0 %v2427_v30  ;;  %1197 = vmatprep.mubr.bf16.mxu1 %v2268_v2  ;;  %v2240_v30 = vld [vmem:[%s2350_s24 + $0x38] ss:$12 sps:$4 sm:$0xff]  }
  0x56   : > { %905 = vmatmul.mubr.bf16.gmra.mrb[8].mxu0 %v2167_v58 }
  0x57   : > { %914 = vmatprep.mubr.bf16.mxu0 %v2171_v59  ;;  %1054 = vmatpush1.bf16.msra.mxu0 %v2439_v33  ;;  %v2245_v33 = vld [vmem:[%s2955_s3] sm:$0xff]  }
  0x58   : > { %1055 = vmatprep.subr.bf16.mxu0 %v2445_v34  ;;  %1843 = vmatpush3.bf16.msra.mxu1 %v2245_v33  ;;  %v2242_v34 = vld [vmem:[%s2350_s24 + $0x68] ss:$12 sps:$4 sm:$0xff]   ;;  %s2883_s24 = scalar_lea.vmem %s2957_s5, %s1726_s19 }
  0x59   : > { %1844 = vmatprep.subr.bf16.mxu1 %v2246_v35 }
  0x5b   : > { %1056 = vmatpush1.bf16.msra.mxu0 %v2454_v36  ;;  %1198 = vmatmul.mubr.bf16.gmra.mrb[24].mxu1 %v2225_v3  ;;  %v2247_v36 = vld [vmem:[%s2955_s3 + $0x8] sm:$0xff]  }
  0x5c   : > { %1057 = vmatprep.subr.bf16.mxu0 %v2463_v38  ;;  %1207 = vmatprep.mubr.bf16.mxu1 %v2268_v2  ;;  %v2248_v38 = vld [vmem:[%s2955_s3 + $0x50] sm:$0xff]  }
  0x5d   : > { %1845 = vmatpush3.bf16.msra.mxu1 %v2247_v36 }
  0x5e   : > { %915 = vmatmul.mubr.bf16.gmra.mrb[12].mxu0 %v2173_v61  ;;  %1846 = vmatprep.subr.bf16.mxu1 %v2248_v38 }
  0x5f   : > { %924 = vmatprep.mubr.bf16.mxu0 %v2179_v62  ;;  %1058 = vmatpush1.bf16.msra.mxu0 %v2475_v41  ;;  %v2252_v41 = vld [vmem:[%s2955_s3 + $0x60] sm:$0xff]  }
  0x60   : > { %1059 = vmatprep.subr.bf16.mxu0 %v2481_v42  ;;  %v2253_v42 = vld [vmem:[%s2955_s3 + $0x20] sm:$0xff]  }
  0x61   : > { %1847 = vmatpush3.bf16.msra.mxu1 %v2249_v39 }
  0x62   : > { %1848 = vmatprep.subr.bf16.mxu1 %v2250_v40 }
  0x63   : > { %1060 = vmatpush1.bf16.msra.mxu0 %v2490_v44  ;;  %1208 = vmatmul.mubr.bf16.gmra.mrb[28].mxu1 %v2229_v6  ;;  %v2255_v44 = vld [vmem:[%s2955_s3 + $0x28] sm:$0xff]  }
  0x64   : > { %1217 = vmatprep.mubr.bf16.mxu1 %v2268_v2 }
  0x66   : > { %925 = vmatmul.mubr.bf16.gmra.mrb[16].mxu0 %v2182_v0 }
  0x67   : > { %934 = vmatprep.mubr.bf16.mxu0 %v2188_v1 }
  0x6b   : > { %1218 = vmatmul.mubr.bf16.gmra.mrb[32].mxu1 %v2233_v9 }
  0x6c   : > { %1227 = vmatprep.mubr.bf16.mxu1 %v2268_v2 }
  0x6e   : > { %935 = vmatmul.mubr.bf16.gmra.mrb[20].mxu0 %v2191_v4 }
  0x6f   : > { %944 = vmatprep.mubr.bf16.mxu0 %v2197_v5 }
  0x73   : > { %1228 = vmatmul.mubr.bf16.gmra.mrb[36].mxu1 %v2237_v12 }
  0x76   : > { %945 = vmatmul.mubr.bf16.gmra.mrb[24].mxu0 %v2200_v7 }
  0x77   : > { %954 = vmatprep.mubr.bf16.mxu0 %v2202_v8  ;;  %v346_v8 = vlaneseq }
  0x7e   : > { %955 = vmatmul.mubr.bf16.gmra.mrb[28].mxu0 %v2204_v10 }
  0x7f   : > { %964 = vmatprep.mubr.bf16.mxu0 %v2206_v11  ;;  %v347_v11 = vshrl.u32 %v346_v8, 7 }
  0x86   : > { %965 = vmatmul.mubr.bf16.gmra.mrb[32].mxu0 %v2208_v13 }
  0x87   : > { %974 = vmatprep.mubr.bf16.mxu0 %v2210_v14  ;;  %v348_v14 = vsub.s32 0, %v347_v11 }
  0x8e   : > { %975 = vmatmul.mubr.bf16.gmra.mrb[36].mxu0 %v2212_v15 }
  0x8f   : > { %984 = vmatprep.mubr.bf16.mxu0 %v2214_v16  ;;  %v344_v16 = vld [vmem:[%s2954_s2] sm:$0x3] }
  0x96   : > { %985 = vmatmul.mubr.bf16.gmra.mrb[40].mxu0 %v2216_v17  ;;  %v352_v17 = vsub.s32 1, %v347_v11 }
  0x97   : > { %994 = vmatprep.mubr.bf16.mxu0 %v2218_v18 }
  0x9e   : > { %995 = vmatmul.mubr.bf16.gmra.mrb[44].mxu0 %v2220_v19  ;;  %v2686_v19 = vrot.slane %v344_v16, %v348_v14 }
  0x9f   : > { %1004 = vmatprep.mubr.bf16.mxu0 %v2222_v20  ;;  %v2688_v20 = vrot.slane %v344_v16, %v352_v17 }
  0xa6   : > { %1005 = vmatmul.mubr.bf16.gmra.mrb[48].mxu0 %v2224_v21 }
  0xa7   : > { %1014 = vmatprep.mubr.bf16.mxu0 %v2226_v22 }
  0xae   : > { %1015 = vmatmul.mubr.bf16.gmra.mrb[52].mxu0 %v2228_v23 }
  0xaf   : > { %1024 = vmatprep.mubr.bf16.mxu0 %v2230_v24 }
  0xb6   : > { %1025 = vmatmul.mubr.bf16.gmra.mrb[56].mxu0 %v2232_v25 }
  0xb7   : > { %1034 = vmatprep.mubr.bf16.mxu0 %v2234_v26 }
  0xbe   : > { %1035 = vmatmul.mubr.bf16.gmra.mrb[60].mxu0 %v2236_v27 }
  0xbf   : > { %1077 = vmatprep.mubr.bf16.mxu0 %v2268_v2 }
  0xc6   : > { %1078 = vmatmul.mubr.bf16.vlgmr.msra.gmra.mrb[0].mxu0 %v2238_v28 }
  0xc7   : > { %1087 = vmatprep.mubr.bf16.mxu0 %v2268_v2 }
  0xce   : > { %1088 = vmatmul.mubr.bf16.gmra.mrb[4].mxu0 %v2239_v29 }
  0xcf   : > { %1097 = vmatprep.mubr.bf16.mxu0 %v2268_v2 }
  0xd6   : > { %1098 = vmatmul.mubr.bf16.gmra.mrb[8].mxu0 %v2240_v30 }
  0xd7   : > { %1107 = vmatprep.mubr.bf16.mxu0 %v2268_v2 }
  0xde   : > { %1108 = vmatmul.mubr.bf16.gmra.mrb[12].mxu0 %v2241_v32 }
  0xdf   : > { %1117 = vmatprep.mubr.bf16.mxu0 %v2268_v2 }
  0xe6   : > { %1118 = vmatmul.mubr.bf16.gmra.mrb[16].mxu0 %v2242_v34 }
  0xe7   : > { %1127 = vmatprep.mubr.bf16.mxu0 %v2268_v2  ;;  %v2251_v2 = vld [vmem:[%s2955_s3 + $0x18] sm:$0xff]  }
  0xe8   : > { %1849 = vmatpush3.bf16.msra.mxu1 %v2251_v2 }
  0xe9   : > { %1850 = vmatprep.subr.bf16.mxu1 %v2252_v41 }
  0xec   : > { %1851 = vmatpush3.bf16.msra.mxu1 %v2253_v42 }
  0xed   : > { %1852 = vmatprep.subr.bf16.mxu1 %v2254_v43 }
  0xee   : > { %1128 = vmatmul.mubr.bf16.gmra.mrb[20].mxu0 %v2243_v37 }
  0xf0   : > { %1853 = vmatpush3.bf16.msra.mxu1 %v2255_v44 }
  0xf1   : > { %1854 = vmatprep.subr.bf16.mxu1 %v2256_v49 }
  0xf4   : > { %1855 = vmatpush3.bf16.msra.mxu1 %v2257_v50 }
  0xf5   : > { %1856 = vmatprep.subr.bf16.mxu1 %v2258_v55 }
  0xf8   : > { %1857 = vmatpush3.bf16.msra.mxu1 %v2259_v56 }
  0xfe   : > { %v1139_v45 = vpop.f32.mrb[0].mxu1 }
  0xff   : > { %v1141_v46 = vpop.f32.mrb[1].mxu1 }
 0x100   : > { %v1143_v47 = vpop.f32.mrb[2].mxu1 }
 0x101   : > { %v1145_v48 = vpop.f32.mrb[3].mxu1 }
 0x106   : > { %v2629_v51 = vpop.f32.mrb[4].mxu1 }
 0x107   : > { %v2631_v52 = vpop.f32.mrb[5].mxu1 }
 0x108   : > { %v2633_v53 = vpop.f32.mrb[6].mxu1 }
 0x109   : > { %v2635_v54 = vpop.f32.mrb[7].mxu1 }
 0x10e   : > { %v2643_v57 = vpop.f32.mrb[8].mxu1 }
 0x10f   : > { %v2645_v58 = vpop.f32.mrb[9].mxu1 }
 0x110   : > { %v2647_v59 = vpop.f32.mrb[10].mxu1 }
 0x111   : > { %v2649_v60 = vpop.f32.mrb[11].mxu1 }
 0x116   : > { %v2651_v61 = vpop.f32.mrb[12].mxu1 }
 0x117   : > { %v2653_v62 = vpop.f32.mrb[13].mxu1 }
 0x118   : > { %v2655_v63 = vpop.f32.mrb[14].mxu1 }
 0x119   : > { %v2657_v0 = vpop.f32.mrb[15].mxu1 }
 0x11e   : > { %v2659_v1 = vpop.f32.mrb[16].mxu1 }
 0x11f   : > { %v2661_v3 = vpop.f32.mrb[17].mxu1 }
 0x120   : > { %v2663_v4 = vpop.f32.mrb[18].mxu1 }
 0x121   : > { %v2665_v5 = vpop.f32.mrb[19].mxu1 }
 0x126   : > { %v2667_v6 = vpop.f32.mrb[20].mxu1 }
 0x127   : > { %v2669_v7 = vpop.f32.mrb[21].mxu1 }
 0x128   : > { %v2671_v9 = vpop.f32.mrb[22].mxu1 }
 0x129   : > { %v2673_v10 = vpop.f32.mrb[23].mxu1 }
 0x12e   : > { %v2675_v12 = vpop.f32.mrb[24].mxu1 }
 0x12f   : > { %v2677_v13 = vpop.f32.mrb[25].mxu1 }
 0x130   : > { %v2679_v15 = vpop.f32.mrb[26].mxu1 }
 0x131   : > { %v2684_v18 = vpop.f32.mrb[27].mxu1 }
 0x136   : > { %v2690_v21 = vpop.f32.mrb[28].mxu1 }
 0x137   : > { %v2692_v23 = vpop.f32.mrb[29].mxu1 }
 0x138   : > { %v2695_v26 = vpop.f32.mrb[30].mxu1 }
 0x139   : > { %v2698_v29 = vpop.f32.mrb[31].mxu1 }
 0x13e   : > { %v2702_v39 = vpop.f32.mrb[32].mxu1 }
 0x13f   : > { %v2704_v42 = vpop.f32.mrb[33].mxu1 }
 0x140   : > { %v2709_v49 = vpop.f32.mrb[34].mxu1 }
 0x149   : > { %v946_v22 = vpop.f32.mrb[24].mxu0 }
 0x14a   : > { %v947_v24 = vadd.f32 %v946_v22, %v2686_v19  ;;  %v948_v25 = vpop.f32.mrb[25].mxu0 }
 0x14b   : > { %v949_v27 = vadd.f32 %v948_v25, %v2688_v20  ;;  %v950_v28 = vpop.f32.mrb[26].mxu0 }
 0x14c   : > { %v951_v30 = vadd.f32 %v950_v28, %v2686_v19  ;;  %v1140_v31 = vadd.f32 %v1139_v45, %v947_v24  ;;  %v952_v32 = vpop.f32.mrb[27].mxu0 }
 0x14d   : > { %v953_v33 = vadd.f32 %v952_v32, %v2688_v20  ;;  %v1142_v34 = vadd.f32 %v1141_v46, %v949_v27 }
 0x14e   : > { %v1144_v35 = vadd.f32 %v1143_v47, %v951_v30  ;;  %v1262_v37 = vmax.f32 %v1140_v31, 0.0 }
 0x14f   : > { %v1146_v36 = vadd.f32 %v1145_v48, %v953_v33  ;;  %v1263_v40 = vmax.f32 %v1142_v34, 0.0  ;;  %v2714_v48 = vpop.f32.mrb[35].mxu1 }
 0x150   : > { %v1264_v38 = vmax.f32 %v1144_v35, 0.0  ;;  %v2722_v25 = vpop.f32.mrb[36].mxu1 }
 0x151   : > { %v1265_v2 = vmax.f32 %v1146_v36, 0.0  ;;  %v956_v41 = vpop.f32.mrb[28].mxu0  ;;  %v2724_v31 = vpop.f32.mrb[37].mxu1 }
 0x152   : > { %v2706_v43 = vpack.c.bf16 %v1264_v38, %v1262_v37  ;;  %v957_v44 = vadd.f32 %v956_v41, %v2686_v19  ;;  %v958_v45 = vpop.f32.mrb[29].mxu0  ;;  %v2729_v34 = vpop.f32.mrb[38].mxu1 }
 0x153   : > { %v2711_v50 = vpack.c.bf16 %v1265_v2, %v1263_v40  ;;  %v959_v46 = vadd.f32 %v958_v45, %v2688_v20  ;;  %v960_v47 = vpop.f32.mrb[30].mxu0  ;;  %v2734_v35 = vpop.f32.mrb[39].mxu1 }
 0x154   : > { %v961_v55 = vadd.f32 %v960_v47, %v2686_v19  ;;  %v1150_v56 = vadd.f32 %v2629_v51, %v957_v44  ;;  %v962_v8 = vpop.f32.mrb[31].mxu0 }
 0x155   : > { %v963_v11 = vadd.f32 %v962_v8, %v2688_v20  ;;  %v1152_v14 = vadd.f32 %v2631_v52, %v959_v46 }
 0x156   : > { %v1154_v16 = vadd.f32 %v2633_v53, %v961_v55  ;;  %v1266_v22 = vmax.f32 %v1150_v56, 0.0 }
 0x157   : > { %v1156_v17 = vadd.f32 %v2635_v54, %v963_v11  ;;  %v1267_v27 = vmax.f32 %v1152_v14, 0.0 }
 0x158   : > { %v1268_v24 = vmax.f32 %v1154_v16, 0.0 }
 0x159   : > { %v1269_v28 = vmax.f32 %v1156_v17, 0.0  ;;  %v966_v30 = vpop.f32.mrb[32].mxu0 }
 0x15a   : > { %v2726_v32 = vpack.c.bf16 %v1268_v24, %v1266_v22  ;;  %v967_v51 = vadd.f32 %v966_v30, %v2686_v19  ;;  %v968_v33 = vpop.f32.mrb[33].mxu0 }
 0x15b   : > { %v2731_v52 = vpack.c.bf16 %v1269_v28, %v1267_v27  ;;  %v969_v53 = vadd.f32 %v968_v33, %v2688_v20  ;;  %v970_v54 = vpop.f32.mrb[34].mxu0 }
 0x15c   : > { %v971_v36 = vadd.f32 %v970_v54, %v2686_v19  ;;  %v1160_v37 = vadd.f32 %v2643_v57, %v967_v51  ;;  %v972_v38 = vpop.f32.mrb[35].mxu0 }
 0x15d   : > { %v973_v40 = vadd.f32 %v972_v38, %v2688_v20  ;;  %v1162_v2 = vadd.f32 %v2645_v58, %v969_v53 }
 0x15e   : > { %v1164_v41 = vadd.f32 %v2647_v59, %v971_v36  ;;  %v1270_v45 = vmax.f32 %v1160_v37, 0.0 }
 0x15f   : > { %v1166_v44 = vadd.f32 %v2649_v60, %v973_v40  ;;  %v1271_v47 = vmax.f32 %v1162_v2, 0.0 }
 0x160   : > { %v1272_v46 = vmax.f32 %v1164_v41, 0.0 }
 0x161   : > { %v1273_v55 = vmax.f32 %v1166_v44, 0.0  ;;  %v976_v56 = vpop.f32.mrb[36].mxu0 }
 0x162   : > { %v2742_v8 = vpack.c.bf16 %v1272_v46, %v1270_v45  ;;  %v977_v11 = vadd.f32 %v976_v56, %v2686_v19  ;;  %v978_v14 = vpop.f32.mrb[37].mxu0 }
 0x163   : > { %v2745_v57 = vpack.c.bf16 %v1273_v55, %v1271_v47  ;;  %v979_v16 = vadd.f32 %v978_v14, %v2688_v20  ;;  %v980_v17 = vpop.f32.mrb[38].mxu0 }
 0x164   : > { %v981_v58 = vadd.f32 %v980_v17, %v2686_v19  ;;  %v1170_v59 = vadd.f32 %v2651_v61, %v977_v11  ;;  %v982_v60 = vpop.f32.mrb[39].mxu0 }
 0x165   : > { %v983_v22 = vadd.f32 %v982_v60, %v2688_v20  ;;  %v1172_v24 = vadd.f32 %v2653_v62, %v979_v16 }
 0x166   : > { %v1174_v27 = vadd.f32 %v2655_v63, %v981_v58  ;;  %v1274_v30 = vmax.f32 %v1170_v59, 0.0 }
 0x167   : > { %v1176_v28 = vadd.f32 %v2657_v0, %v983_v22  ;;  %v1275_v33 = vmax.f32 %v1172_v24, 0.0 }
 0x168   : > { %v1276_v51 = vmax.f32 %v1174_v27, 0.0 }
 0x169   : > { %v1277_v53 = vmax.f32 %v1176_v28, 0.0  ;;  %v986_v54 = vpop.f32.mrb[40].mxu0 }
 0x16a   : > { %v2754_v36 = vpack.c.bf16 %v1276_v51, %v1274_v30  ;;  %v987_v37 = vadd.f32 %v986_v54, %v2686_v19  ;;  %v988_v38 = vpop.f32.mrb[41].mxu0 }
 0x16b   : > { %v2757_v61 = vpack.c.bf16 %v1277_v53, %v1275_v33  ;;  %v989_v40 = vadd.f32 %v988_v38, %v2688_v20  ;;  %v990_v2 = vpop.f32.mrb[42].mxu0 }
 0x16c   : > { %v991_v62 = vadd.f32 %v990_v2, %v2686_v19  ;;  %v1180_v63 = vadd.f32 %v2659_v1, %v987_v37  ;;  %v992_v0 = vpop.f32.mrb[43].mxu0 }
 0x16d   : > { %v993_v41 = vadd.f32 %v992_v0, %v2688_v20  ;;  %v1182_v44 = vadd.f32 %v2661_v3, %v989_v40 }
 0x16e   : > { %v1184_v45 = vadd.f32 %v2663_v4, %v991_v62  ;;  %v1278_v47 = vmax.f32 %v1180_v63, 0.0 }
 0x16f   : > { %v1186_v46 = vadd.f32 %v2665_v5, %v993_v41  ;;  %v1279_v56 = vmax.f32 %v1182_v44, 0.0 }
 0x170   : > { %v1280_v55 = vmax.f32 %v1184_v45, 0.0 }
 0x171   : > { %v1281_v11 = vmax.f32 %v1186_v46, 0.0  ;;  %v996_v14 = vpop.f32.mrb[44].mxu0 }
 0x172   : > { %v2766_v16 = vpack.c.bf16 %v1280_v55, %v1278_v47  ;;  %v997_v17 = vadd.f32 %v996_v14, %v2686_v19  ;;  %v998_v58 = vpop.f32.mrb[45].mxu0 }
 0x173   : > { %v2769_v1 = vpack.c.bf16 %v1281_v11, %v1279_v56  ;;  %v999_v59 = vadd.f32 %v998_v58, %v2688_v20  ;;  %v1000_v60 = vpop.f32.mrb[46].mxu0 }
 0x174   : > { %v1001_v3 = vadd.f32 %v1000_v60, %v2686_v19  ;;  %v1190_v4 = vadd.f32 %v2667_v6, %v997_v17  ;;  %v1002_v5 = vpop.f32.mrb[47].mxu0 }
 0x175   : > { %v1003_v22 = vadd.f32 %v1002_v5, %v2688_v20  ;;  %v1192_v24 = vadd.f32 %v2669_v7, %v999_v59 }
 0x176   : > { %v1194_v27 = vadd.f32 %v2671_v9, %v1001_v3  ;;  %v1282_v30 = vmax.f32 %v1190_v4, 0.0 }
 0x177   : > { %v1196_v28 = vadd.f32 %v2673_v10, %v1003_v22  ;;  %v1283_v33 = vmax.f32 %v1192_v24, 0.0 }
 0x178   : > { %v1284_v51 = vmax.f32 %v1194_v27, 0.0 }
 0x179   : > { %v1285_v53 = vmax.f32 %v1196_v28, 0.0  ;;  %v1006_v54 = vpop.f32.mrb[48].mxu0 }
 0x17a   : > { %v2778_v37 = vpack.c.bf16 %v1284_v51, %v1282_v30  ;;  %v1007_v38 = vadd.f32 %v1006_v54, %v2686_v19  ;;  %v1008_v40 = vpop.f32.mrb[49].mxu0 }
 0x17b   : > { %v2781_v6 = vpack.c.bf16 %v1285_v53, %v1283_v33  ;;  %v1009_v2 = vadd.f32 %v1008_v40, %v2688_v20  ;;  %v1010_v62 = vpop.f32.mrb[50].mxu0 }
 0x17c   : > { %v1011_v7 = vadd.f32 %v1010_v62, %v2686_v19  ;;  %v1200_v9 = vadd.f32 %v2675_v12, %v1007_v38  ;;  %v1012_v10 = vpop.f32.mrb[51].mxu0 }
 0x17d   : > { %v1013_v63 = vadd.f32 %v1012_v10, %v2688_v20  ;;  %v1202_v0 = vadd.f32 %v2677_v13, %v1009_v2 }
 0x17e   : > { %v1204_v41 = vadd.f32 %v2679_v15, %v1011_v7  ;;  %v1286_v45 = vmax.f32 %v1200_v9, 0.0 }
 0x17f   : > { %v1206_v44 = vadd.f32 %v2684_v18, %v1013_v63  ;;  %v1287_v47 = vmax.f32 %v1202_v0, 0.0 }
 0x180   : > { %v1288_v46 = vmax.f32 %v1204_v41, 0.0 }
 0x181   : > { %v1289_v55 = vmax.f32 %v1206_v44, 0.0  ;;  %v1016_v56 = vpop.f32.mrb[52].mxu0 }
 0x182   : > { %v2790_v11 = vpack.c.bf16 %v1288_v46, %v1286_v45  ;;  %v1017_v14 = vadd.f32 %v1016_v56, %v2686_v19  ;;  %v1018_v17 = vpop.f32.mrb[53].mxu0 }
 0x183   : > { %v2793_v12 = vpack.c.bf16 %v1289_v55, %v1287_v47  ;;  %v1019_v58 = vadd.f32 %v1018_v17, %v2688_v20  ;;  %v1020_v59 = vpop.f32.mrb[54].mxu0 }
 0x184   : > { %v1021_v13 = vadd.f32 %v1020_v59, %v2686_v19  ;;  %v1210_v15 = vadd.f32 %v2690_v21, %v1017_v14  ;;  %v1022_v18 = vpop.f32.mrb[55].mxu0 }
 0x185   : > { %v1023_v60 = vadd.f32 %v1022_v18, %v2688_v20  ;;  %v1212_v3 = vadd.f32 %v2692_v23, %v1019_v58 }
 0x186   : > { %v1214_v4 = vadd.f32 %v2695_v26, %v1021_v13  ;;  %v1290_v22 = vmax.f32 %v1210_v15, 0.0 }
 0x187   : > { %v1216_v5 = vadd.f32 %v2698_v29, %v1023_v60  ;;  %v1291_v27 = vmax.f32 %v1212_v3, 0.0 }
 0x188   : > { %v1292_v24 = vmax.f32 %v1214_v4, 0.0 }
 0x189   : > { %v1293_v28 = vmax.f32 %v1216_v5, 0.0  ;;  %v1026_v30 = vpop.f32.mrb[56].mxu0 }
 0x18a   : > { %v2802_v51 = vpack.c.bf16 %v1292_v24, %v1290_v22  ;;  %v1027_v33 = vadd.f32 %v1026_v30, %v2686_v19  ;;  %v1028_v53 = vpop.f32.mrb[57].mxu0 }
 0x18b   : > { %v2805_v21 = vpack.c.bf16 %v1293_v28, %v1291_v27  ;;  %v1029_v54 = vadd.f32 %v1028_v53, %v2688_v20  ;;  %v1030_v38 = vpop.f32.mrb[58].mxu0 }
 0x18c   : > { %v1031_v23 = vadd.f32 %v1030_v38, %v2686_v19  ;;  %v1220_v26 = vadd.f32 %v2702_v39, %v1027_v33  ;;  %v1032_v29 = vpop.f32.mrb[59].mxu0 }
 0x18d   : > { %v1033_v40 = vadd.f32 %v1032_v29, %v2688_v20  ;;  %v1222_v2 = vadd.f32 %v2704_v42, %v1029_v54 }
 0x18e   : > { %v1224_v62 = vadd.f32 %v2709_v49, %v1031_v23  ;;  %v1294_v9 = vmax.f32 %v1220_v26, 0.0 }
 0x18f   : > { %v1226_v7 = vadd.f32 %v2714_v48, %v1033_v40  ;;  %v1295_v63 = vmax.f32 %v1222_v2, 0.0 }
 0x190   : > { %v1296_v10 = vmax.f32 %v1224_v62, 0.0 }
 0x191   : > { %v1297_v0 = vmax.f32 %v1226_v7, 0.0  ;;  %v1036_v41 = vpop.f32.mrb[60].mxu0 }
 0x192   : > { %v2814_v44 = vpack.c.bf16 %v1296_v10, %v1294_v9  ;;  %v1037_v45 = vadd.f32 %v1036_v41, %v2686_v19  ;;  %v1038_v46 = vpop.f32.mrb[61].mxu0 }
 0x193   : > { %v2817_v39 = vpack.c.bf16 %v1297_v0, %v1295_v63  ;;  %v1039_v47 = vadd.f32 %v1038_v46, %v2688_v20  ;;  %v1040_v55 = vpop.f32.mrb[62].mxu0 }
 0x194   : > { %v1041_v42 = vadd.f32 %v1040_v55, %v2686_v19  ;;  %v1230_v49 = vadd.f32 %v2722_v25, %v1037_v45  ;;  %v1042_v48 = vpop.f32.mrb[63].mxu0 }
 0x195   : > { %v1043_v56 = vadd.f32 %v1042_v48, %v2688_v20  ;;  %v1232_v14 = vadd.f32 %v2724_v31, %v1039_v47 }
 0x196   : > { %v1234_v17 = vadd.f32 %v2729_v34, %v1041_v42  ;;  %v1298_v59 = vmax.f32 %v1230_v49, 0.0 }
 0x197   : > { %v1236_v58 = vadd.f32 %v2734_v35, %v1043_v56  ;;  %v1299_v15 = vmax.f32 %v1232_v14, 0.0 }
 0x198   : > { %v1300_v13 = vmax.f32 %v1234_v17, 0.0 }
 0x199   : > { %v1301_v18 = vmax.f32 %v1236_v58, 0.0  ;;  %v1079_v60 = vpop.f32.mrb[0].mxu0 }
 0x19a   : > { %v2826_v3 = vpack.c.bf16 %v1300_v13, %v1298_v59  ;;  %v1970_v4 = vadd.f32 %v1079_v60, %v2686_v19  ;;  %v1081_v5 = vpop.f32.mrb[1].mxu0 }
 0x19b   : > { %v2829_v25 = vpack.c.bf16 %v1301_v18, %v1299_v15  ;;  %v1971_v22 = vadd.f32 %v1081_v5, %v2688_v20  ;;  %v1083_v24 = vpop.f32.mrb[2].mxu0 }
 0x19c   : > { %v1972_v31 = vadd.f32 %v1083_v24, %v2686_v19  ;;  %v1085_v34 = vpop.f32.mrb[3].mxu0  ;;  %v1238_v27 = vmax.f32 %v1970_v4, 0.0 }
 0x19d   : > { %v1973_v35 = vadd.f32 %v1085_v34, %v2688_v20  ;;  %v1239_v30 = vmax.f32 %v1971_v22, 0.0 }
 0x19e   : > { %v1240_v28 = vmax.f32 %v1972_v31, 0.0 }
 0x19f   : > { %v1241_v33 = vmax.f32 %v1973_v35, 0.0 }
 0x1a0   : > { %v1302_v53 = vpack.c.bf16 %v1240_v28, %v1238_v27 }
 0x1a1   : > { %v1303_v54 = vpack.c.bf16 %v1241_v33, %v1239_v30  ;;  %v1089_v38 = vpop.f32.mrb[4].mxu0 }
 0x1a2   : > { %v1974_v23 = vadd.f32 %v1089_v38, %v2686_v19  ;;  %v1091_v26 = vpop.f32.mrb[5].mxu0 }
 0x1a3   : > { %v1975_v29 = vadd.f32 %v1091_v26, %v2688_v20  ;;  %v1093_v40 = vpop.f32.mrb[6].mxu0  ;;  %1501 = vmatprep.mubr.bf16.mxu1 %v1303_v54 }
 0x1a4   : > { %v1976_v2 = vadd.f32 %v1093_v40, %v2686_v19  ;;  %v1095_v62 = vpop.f32.mrb[7].mxu0  ;;  %1502 = vmatmul.mubr.bf16.vlgmr.msra.gmra.mrb[40].mxu1 %v1302_v53  ;;  %v1242_v9 = vmax.f32 %v1974_v23, 0.0 }
 0x1a5   : > { %v1977_v7 = vadd.f32 %v1095_v62, %v2688_v20  ;;  %v1243_v63 = vmax.f32 %v1975_v29, 0.0 }
 0x1a6   : > { %v1244_v10 = vmax.f32 %v1976_v2, 0.0 }
 0x1a7   : > { %v1245_v0 = vmax.f32 %v1977_v7, 0.0 }
 0x1a8   : > { %v1304_v41 = vpack.c.bf16 %v1244_v10, %v1242_v9 }
 0x1a9   : > { %v1305_v45 = vpack.c.bf16 %v1245_v0, %v1243_v63  ;;  %v1099_v46 = vpop.f32.mrb[8].mxu0 }
 0x1aa   : > { %v1978_v47 = vadd.f32 %v1099_v46, %v2686_v19  ;;  %v1101_v55 = vpop.f32.mrb[9].mxu0 }
 0x1ab   : > { %v1979_v42 = vadd.f32 %v1101_v55, %v2688_v20  ;;  %v1103_v49 = vpop.f32.mrb[10].mxu0  ;;  %1509 = vmatprep.mubr.bf16.mxu1 %v1305_v45 }
 0x1ac   : > { %v1980_v48 = vadd.f32 %v1103_v49, %v2686_v19  ;;  %v1105_v56 = vpop.f32.mrb[11].mxu0  ;;  %1510 = vmatmul.mubr.bf16.gmra.mrb[44].mxu1 %v1304_v41  ;;  %v1246_v17 = vmax.f32 %v1978_v47, 0.0 }
 0x1ad   : > { %v1981_v14 = vadd.f32 %v1105_v56, %v2688_v20  ;;  %v1247_v59 = vmax.f32 %v1979_v42, 0.0 }
 0x1ae   : > { %v1248_v58 = vmax.f32 %v1980_v48, 0.0 }
 0x1af   : > { %v1249_v13 = vmax.f32 %v1981_v14, 0.0 }
 0x1b0   : > { %v1306_v15 = vpack.c.bf16 %v1248_v58, %v1246_v17 }
 0x1b1   : > { %v1307_v18 = vpack.c.bf16 %v1249_v13, %v1247_v59  ;;  %v1109_v60 = vpop.f32.mrb[12].mxu0 }
 0x1b2   : > { %v1982_v4 = vadd.f32 %v1109_v60, %v2686_v19  ;;  %v1111_v5 = vpop.f32.mrb[13].mxu0 }
 0x1b3   : > { %v1983_v22 = vadd.f32 %v1111_v5, %v2688_v20  ;;  %v1113_v24 = vpop.f32.mrb[14].mxu0  ;;  %1517 = vmatprep.mubr.bf16.mxu1 %v1307_v18 }
 0x1b4   : > { %v1984_v31 = vadd.f32 %v1113_v24, %v2686_v19  ;;  %v1115_v34 = vpop.f32.mrb[15].mxu0  ;;  %1518 = vmatmul.mubr.bf16.gmra.mrb[48].mxu1 %v1306_v15  ;;  %v1250_v27 = vmax.f32 %v1982_v4, 0.0 }
 0x1b5   : > { %v1985_v35 = vadd.f32 %v1115_v34, %v2688_v20  ;;  %v1251_v30 = vmax.f32 %v1983_v22, 0.0 }
 0x1b6   : > { %v1252_v28 = vmax.f32 %v1984_v31, 0.0 }
 0x1b7   : > { %v1253_v33 = vmax.f32 %v1985_v35, 0.0 }
 0x1b8   : > { %v1308_v53 = vpack.c.bf16 %v1252_v28, %v1250_v27 }
 0x1b9   : > { %v1309_v54 = vpack.c.bf16 %v1253_v33, %v1251_v30  ;;  %v1119_v38 = vpop.f32.mrb[16].mxu0 }
 0x1ba   : > { %v1986_v23 = vadd.f32 %v1119_v38, %v2686_v19  ;;  %v1121_v26 = vpop.f32.mrb[17].mxu0 }
 0x1bb   : > { %v1987_v29 = vadd.f32 %v1121_v26, %v2688_v20  ;;  %v1123_v40 = vpop.f32.mrb[18].mxu0  ;;  %1525 = vmatprep.mubr.bf16.mxu1 %v1309_v54 }
 0x1bc   : > { %v1988_v2 = vadd.f32 %v1123_v40, %v2686_v19  ;;  %v1125_v62 = vpop.f32.mrb[19].mxu0  ;;  %1526 = vmatmul.mubr.bf16.gmra.mrb[52].mxu1 %v1308_v53  ;;  %v1254_v9 = vmax.f32 %v1986_v23, 0.0 }
 0x1bd   : > { %v1989_v7 = vadd.f32 %v1125_v62, %v2688_v20  ;;  %v1255_v63 = vmax.f32 %v1987_v29, 0.0 }
 0x1be   : > { %v1256_v10 = vmax.f32 %v1988_v2, 0.0 }
 0x1bf   : > { %v1257_v0 = vmax.f32 %v1989_v7, 0.0 }
 0x1c0   : > { %v1310_v41 = vpack.c.bf16 %v1256_v10, %v1254_v9 }
 0x1c1   : > { %v1311_v45 = vpack.c.bf16 %v1257_v0, %v1255_v63  ;;  %v1129_v46 = vpop.f32.mrb[20].mxu0 }
 0x1c2   : > { %v1990_v47 = vadd.f32 %v1129_v46, %v2686_v19  ;;  %v1131_v55 = vpop.f32.mrb[21].mxu0 }
 0x1c3   : > { %v1991_v42 = vadd.f32 %v1131_v55, %v2688_v20  ;;  %v1133_v49 = vpop.f32.mrb[22].mxu0  ;;  %1533 = vmatprep.mubr.bf16.mxu1 %v1311_v45 }
 0x1c4   : > { %v1992_v48 = vadd.f32 %v1133_v49, %v2686_v19  ;;  %v1135_v56 = vpop.f32.mrb[23].mxu0  ;;  %1534 = vmatmul.mubr.bf16.gmra.mrb[56].mxu1 %v1310_v41  ;;  %v1258_v17 = vmax.f32 %v1990_v47, 0.0 }
 0x1c5   : > { %v1993_v14 = vadd.f32 %v1135_v56, %v2688_v20  ;;  %v1259_v59 = vmax.f32 %v1991_v42, 0.0  ;;  %v2878_v20 = vld [vmem:[%s2956_s4] ss:$0 sm:$0xff] }
 0x1c6   : > { %v1260_v58 = vmax.f32 %v1992_v48, 0.0 }
 0x1c7   : > { %v1261_v13 = vmax.f32 %v1993_v14, 0.0 }
 0x1c8   : > { %v1312_v15 = vpack.c.bf16 %v1260_v58, %v1258_v17 }
 0x1c9   : > { %v1313_v18 = vpack.c.bf16 %v1261_v13, %v1259_v59 }
 0x1cb   : > { %1541 = vmatprep.mubr.bf16.mxu1 %v1313_v18 }
 0x1cc   : > { %1542 = vmatmul.mubr.bf16.gmra.mrb[60].mxu1 %v1312_v15 }
 0x1cd   : > { %1549 = vmatprep.mubr.bf16.mxu1 %v2711_v50 }
 0x1d4   : > { %1550 = vmatmul.mubr.bf16.gmra.mrb[64].mxu1 %v2706_v43 }
 0x1d5   : > { %1557 = vmatprep.mubr.bf16.mxu1 %v2731_v52 }
 0x1dc   : > { %1558 = vmatmul.mubr.bf16.gmra.mrb[68].mxu1 %v2726_v32 }
 0x1dd   : > { %1565 = vmatprep.mubr.bf16.mxu1 %v2745_v57 }
 0x1e4   : > { %1566 = vmatmul.mubr.bf16.gmra.mrb[72].mxu1 %v2742_v8 }
 0x1e5   : > { %1573 = vmatprep.mubr.bf16.mxu1 %v2757_v61 }
 0x1ec   : > { %1574 = vmatmul.mubr.bf16.gmra.mrb[76].mxu1 %v2754_v36 }
 0x1ed   : > { %1581 = vmatprep.mubr.bf16.mxu1 %v2769_v1 }
 0x1f4   : > { %1582 = vmatmul.mubr.bf16.gmra.mrb[80].mxu1 %v2766_v16 }
 0x1f5   : > { %1589 = vmatprep.mubr.bf16.mxu1 %v2781_v6 }
 0x1fc   : > { %1590 = vmatmul.mubr.bf16.gmra.mrb[84].mxu1 %v2778_v37 }
 0x1fd   : > { %1597 = vmatprep.mubr.bf16.mxu1 %v2793_v12 }
 0x204   : > { %1598 = vmatmul.mubr.bf16.gmra.mrb[88].mxu1 %v2790_v11 }
 0x205   : > { %1605 = vmatprep.mubr.bf16.mxu1 %v2805_v21 }
 0x20c   : > { %1606 = vmatmul.mubr.bf16.gmra.mrb[92].mxu1 %v2802_v51 }
 0x20d   : > { %1613 = vmatprep.mubr.bf16.mxu1 %v2817_v39 }
 0x214   : > { %1614 = vmatmul.mubr.bf16.gmra.mrb[96].mxu1 %v2814_v44 }
 0x215   : > { %1621 = vmatprep.mubr.bf16.mxu1 %v2829_v25 }
 0x21c   : > { %1622 = vmatmul.mubr.bf16.gmra.mrb[100].mxu1 %v2826_v3 }
 0x277   : > { %v1858_v19 = vpop.f32.mrb[40].mxu1 }
 0x278   : > { %v1859_v43 = vpop.f32.mrb[41].mxu1 }
 0x279   : > { %v1860_v50 = vadd.f32 %v1859_v43, %v1858_v19  ;;  %v1861_v32 = vpop.f32.mrb[42].mxu1 }
 0x27a   : > { %v1862_v52 = vpop.f32.mrb[43].mxu1 }
 0x27b   : > { %v1504_v8 = vadd.f32 %v1860_v50, %v2878_v20  ;;  %v1863_v57 = vadd.f32 %v1862_v52, %v1861_v32 }
 0x27d   : > { %1630 = vst [vmem:[%s2883_s24] sm:$0xff] %v1504_v8  ;;  %v1507_v36 = vadd.f32 %v1863_v57, %v2878_v20 }
 0x27f   : > { %1631 = vst [vmem:[%s2883_s24 + $0x8] sm:$0xff] %v1507_v36  ;;  %v1864_v61 = vpop.f32.mrb[44].mxu1 }
 0x280   : > { %v1865_v16 = vpop.f32.mrb[45].mxu1 }
 0x281   : > { %v1866_v1 = vadd.f32 %v1865_v16, %v1864_v61  ;;  %v1867_v37 = vpop.f32.mrb[46].mxu1 }
 0x282   : > { %v1868_v6 = vpop.f32.mrb[47].mxu1 }
 0x283   : > { %v1512_v11 = vadd.f32 %v1866_v1, %v2878_v20  ;;  %v1869_v12 = vadd.f32 %v1868_v6, %v1867_v37 }
 0x285   : > { %1632 = vst [vmem:[%s2883_s24 + $0x10] sm:$0xff] %v1512_v11  ;;  %v1515_v51 = vadd.f32 %v1869_v12, %v2878_v20 }
 0x287   : > { %1633 = vst [vmem:[%s2883_s24 + $0x18] sm:$0xff] %v1515_v51  ;;  %v1870_v21 = vpop.f32.mrb[48].mxu1 }
 0x288   : > { %v1871_v44 = vpop.f32.mrb[49].mxu1 }
 0x289   : > { %v1872_v39 = vadd.f32 %v1871_v44, %v1870_v21  ;;  %v1873_v3 = vpop.f32.mrb[50].mxu1 }
 0x28a   : > { %v1874_v25 = vpop.f32.mrb[51].mxu1 }
 0x28b   : > { %v1520_v60 = vadd.f32 %v1872_v39, %v2878_v20  ;;  %v1875_v4 = vadd.f32 %v1874_v25, %v1873_v3 }
 0x28d   : > { %1634 = vst [vmem:[%s2883_s24 + $0x20] sm:$0xff] %v1520_v60  ;;  %v1523_v5 = vadd.f32 %v1875_v4, %v2878_v20 }
 0x28f   : > { %1635 = vst [vmem:[%s2883_s24 + $0x28] sm:$0xff] %v1523_v5  ;;  %v1876_v22 = vpop.f32.mrb[52].mxu1 }
 0x290   : > { %v1877_v24 = vpop.f32.mrb[53].mxu1 }
 0x291   : > { %v1878_v31 = vadd.f32 %v1877_v24, %v1876_v22  ;;  %v1879_v34 = vpop.f32.mrb[54].mxu1 }
 0x292   : > { %v1880_v35 = vpop.f32.mrb[55].mxu1 }
 0x293   : > { %v1528_v27 = vadd.f32 %v1878_v31, %v2878_v20  ;;  %v1881_v28 = vadd.f32 %v1880_v35, %v1879_v34 }
 0x295   : > { %1636 = vst [vmem:[%s2883_s24 + $0x30] sm:$0xff] %v1528_v27  ;;  %v1531_v30 = vadd.f32 %v1881_v28, %v2878_v20 }
 0x297   : > { %1637 = vst [vmem:[%s2883_s24 + $0x38] sm:$0xff] %v1531_v30  ;;  %v1882_v33 = vpop.f32.mrb[56].mxu1 }
 0x298   : > { %v1883_v53 = vpop.f32.mrb[57].mxu1 }
 0x299   : > { %v1884_v54 = vadd.f32 %v1883_v53, %v1882_v33  ;;  %v1885_v38 = vpop.f32.mrb[58].mxu1 }
 0x29a   : > { %v1886_v23 = vpop.f32.mrb[59].mxu1 }
 0x29b   : > { %v1536_v26 = vadd.f32 %v1884_v54, %v2878_v20  ;;  %v1887_v29 = vadd.f32 %v1886_v23, %v1885_v38 }
 0x29d   : > { %1638 = vst [vmem:[%s2883_s24 + $0x40] sm:$0xff] %v1536_v26  ;;  %v1539_v40 = vadd.f32 %v1887_v29, %v2878_v20 }
 0x29f   : > { %1639 = vst [vmem:[%s2883_s24 + $0x48] sm:$0xff] %v1539_v40  ;;  %v1888_v2 = vpop.f32.mrb[60].mxu1 }
 0x2a0   : > { %v1889_v62 = vpop.f32.mrb[61].mxu1 }
 0x2a1   : > { %v1890_v7 = vadd.f32 %v1889_v62, %v1888_v2  ;;  %v1891_v9 = vpop.f32.mrb[62].mxu1 }
 0x2a2   : > { %v1892_v10 = vpop.f32.mrb[63].mxu1 }
 0x2a3   : > { %v1544_v63 = vadd.f32 %v1890_v7, %v2878_v20  ;;  %v1893_v0 = vadd.f32 %v1892_v10, %v1891_v9 }
 0x2a5   : > { %1640 = vst [vmem:[%s2883_s24 + $0x50] sm:$0xff] %v1544_v63  ;;  %v1547_v41 = vadd.f32 %v1893_v0, %v2878_v20 }
 0x2a7   : > { %1641 = vst [vmem:[%s2883_s24 + $0x58] sm:$0xff] %v1547_v41  ;;  %v1894_v45 = vpop.f32.mrb[64].mxu1 }
 0x2a8   : > { %v1895_v46 = vpop.f32.mrb[65].mxu1 }
 0x2a9   : > { %v1896_v47 = vadd.f32 %v1895_v46, %v1894_v45  ;;  %v1897_v55 = vpop.f32.mrb[66].mxu1 }
 0x2aa   : > { %v1898_v42 = vpop.f32.mrb[67].mxu1 }
 0x2ab   : > { %v1552_v49 = vadd.f32 %v1896_v47, %v2878_v20  ;;  %v1899_v48 = vadd.f32 %v1898_v42, %v1897_v55 }
 0x2ad   : > { %1642 = vst [vmem:[%s2883_s24 + $0x60] sm:$0xff] %v1552_v49  ;;  %v1555_v56 = vadd.f32 %v1899_v48, %v2878_v20 }
 0x2af   : > { %1643 = vst [vmem:[%s2883_s24 + $0x68] sm:$0xff] %v1555_v56  ;;  %v1900_v14 = vpop.f32.mrb[68].mxu1 }
 0x2b0   : > { %v1901_v17 = vpop.f32.mrb[69].mxu1 }
 0x2b1   : > { %v1902_v58 = vadd.f32 %v1901_v17, %v1900_v14  ;;  %v1903_v59 = vpop.f32.mrb[70].mxu1 }
 0x2b2   : > { %v1904_v13 = vpop.f32.mrb[71].mxu1 }
 0x2b3   : > { %v1560_v15 = vadd.f32 %v1902_v58, %v2878_v20  ;;  %v1905_v18 = vadd.f32 %v1904_v13, %v1903_v59 }
 0x2b5   : > { %1644 = vst [vmem:[%s2883_s24 + $0x70] sm:$0xff] %v1560_v15  ;;  %v1563_v19 = vadd.f32 %v1905_v18, %v2878_v20 }
 0x2b7   : > { %1645 = vst [vmem:[%s2883_s24 + $0x78] sm:$0xff] %v1563_v19  ;;  %v1906_v43 = vpop.f32.mrb[72].mxu1 }
 0x2b8   : > { %v1907_v50 = vpop.f32.mrb[73].mxu1 }
 0x2b9   : > { %v1908_v32 = vadd.f32 %v1907_v50, %v1906_v43  ;;  %v1909_v52 = vpop.f32.mrb[74].mxu1 }
 0x2ba   : > { %v1910_v8 = vpop.f32.mrb[75].mxu1 }
 0x2bb   : > { %v1568_v57 = vadd.f32 %v1908_v32, %v2878_v20  ;;  %v1911_v36 = vadd.f32 %v1910_v8, %v1909_v52 }
 0x2bd   : > { %1646 = vst [vmem:[%s2883_s24 + $0x80] sm:$0xff] %v1568_v57  ;;  %v1571_v61 = vadd.f32 %v1911_v36, %v2878_v20 }
 0x2bf   : > { %1647 = vst [vmem:[%s2883_s24 + $0x88] sm:$0xff] %v1571_v61  ;;  %v1912_v16 = vpop.f32.mrb[76].mxu1 }
 0x2c0   : > { %v1913_v1 = vpop.f32.mrb[77].mxu1 }
 0x2c1   : > { %v1914_v37 = vadd.f32 %v1913_v1, %v1912_v16  ;;  %v1915_v6 = vpop.f32.mrb[78].mxu1 }
 0x2c2   : > { %v1916_v11 = vpop.f32.mrb[79].mxu1 }
 0x2c3   : > { %v1576_v12 = vadd.f32 %v1914_v37, %v2878_v20  ;;  %v1917_v51 = vadd.f32 %v1916_v11, %v1915_v6 }
 0x2c5   : > { %1648 = vst [vmem:[%s2883_s24 + $0x90] sm:$0xff] %v1576_v12  ;;  %v1579_v21 = vadd.f32 %v1917_v51, %v2878_v20 }
 0x2c7   : > { %1649 = vst [vmem:[%s2883_s24 + $0x98] sm:$0xff] %v1579_v21  ;;  %v1918_v44 = vpop.f32.mrb[80].mxu1 }
 0x2c8   : > { %v1919_v39 = vpop.f32.mrb[81].mxu1 }
 0x2c9   : > { %v1920_v3 = vadd.f32 %v1919_v39, %v1918_v44  ;;  %v1921_v25 = vpop.f32.mrb[82].mxu1 }
 0x2ca   : > { %v1922_v60 = vpop.f32.mrb[83].mxu1 }
 0x2cb   : > { %v1584_v4 = vadd.f32 %v1920_v3, %v2878_v20  ;;  %v1923_v5 = vadd.f32 %v1922_v60, %v1921_v25 }
 0x2cd   : > { %1650 = vst [vmem:[%s2883_s24 + $0xa0] sm:$0xff] %v1584_v4  ;;  %v1587_v22 = vadd.f32 %v1923_v5, %v2878_v20 }
 0x2cf   : > { %1651 = vst [vmem:[%s2883_s24 + $0xa8] sm:$0xff] %v1587_v22  ;;  %v1924_v24 = vpop.f32.mrb[84].mxu1 }
 0x2d0   : > { %v1925_v31 = vpop.f32.mrb[85].mxu1 }
 0x2d1   : > { %v1926_v34 = vadd.f32 %v1925_v31, %v1924_v24  ;;  %v1927_v35 = vpop.f32.mrb[86].mxu1 }
 0x2d2   : > { %v1928_v27 = vpop.f32.mrb[87].mxu1 }
 0x2d3   : > { %v1592_v28 = vadd.f32 %v1926_v34, %v2878_v20  ;;  %v1929_v30 = vadd.f32 %v1928_v27, %v1927_v35 }
 0x2d5   : > { %1652 = vst [vmem:[%s2883_s24 + $0xb0] sm:$0xff] %v1592_v28  ;;  %v1595_v33 = vadd.f32 %v1929_v30, %v2878_v20 }
 0x2d7   : > { %1653 = vst [vmem:[%s2883_s24 + $0xb8] sm:$0xff] %v1595_v33  ;;  %v1930_v53 = vpop.f32.mrb[88].mxu1 }
 0x2d8   : > { %v1931_v54 = vpop.f32.mrb[89].mxu1 }
 0x2d9   : > { %v1932_v38 = vadd.f32 %v1931_v54, %v1930_v53  ;;  %v1933_v23 = vpop.f32.mrb[90].mxu1 }
 0x2da   : > { %v1934_v26 = vpop.f32.mrb[91].mxu1 }
 0x2db   : > { %v1600_v29 = vadd.f32 %v1932_v38, %v2878_v20  ;;  %v1935_v40 = vadd.f32 %v1934_v26, %v1933_v23 }
 0x2dd   : > { %1654 = vst [vmem:[%s2883_s24 + $0xc0] sm:$0xff] %v1600_v29  ;;  %v1603_v2 = vadd.f32 %v1935_v40, %v2878_v20 }
 0x2df   : > { %1655 = vst [vmem:[%s2883_s24 + $0xc8] sm:$0xff] %v1603_v2  ;;  %v1936_v62 = vpop.f32.mrb[92].mxu1 }
 0x2e0   : > { %v1937_v7 = vpop.f32.mrb[93].mxu1 }
 0x2e1   : > { %v1938_v9 = vadd.f32 %v1937_v7, %v1936_v62  ;;  %v1939_v10 = vpop.f32.mrb[94].mxu1 }
 0x2e2   : > { %v1940_v63 = vpop.f32.mrb[95].mxu1 }
 0x2e3   : > { %v1608_v0 = vadd.f32 %v1938_v9, %v2878_v20  ;;  %v1941_v41 = vadd.f32 %v1940_v63, %v1939_v10 }
 0x2e5   : > { %1656 = vst [vmem:[%s2883_s24 + $0xd0] sm:$0xff] %v1608_v0  ;;  %v1611_v45 = vadd.f32 %v1941_v41, %v2878_v20 }
 0x2e7   : > { %1657 = vst [vmem:[%s2883_s24 + $0xd8] sm:$0xff] %v1611_v45  ;;  %v1942_v46 = vpop.f32.mrb[96].mxu1 }
 0x2e8   : > { %v1943_v47 = vpop.f32.mrb[97].mxu1 }
 0x2e9   : > { %v1944_v55 = vadd.f32 %v1943_v47, %v1942_v46  ;;  %v1945_v42 = vpop.f32.mrb[98].mxu1 }
 0x2ea   : > { %v1946_v49 = vpop.f32.mrb[99].mxu1 }
 0x2eb   : > { %v1616_v48 = vadd.f32 %v1944_v55, %v2878_v20  ;;  %v1947_v56 = vadd.f32 %v1946_v49, %v1945_v42 }
 0x2ed   : > { %1658 = vst [vmem:[%s2883_s24 + $0xe0] sm:$0xff] %v1616_v48  ;;  %v1619_v14 = vadd.f32 %v1947_v56, %v2878_v20 }
 0x2ef   : > { %1659 = vst [vmem:[%s2883_s24 + $0xe8] sm:$0xff] %v1619_v14  ;;  %v1948_v17 = vpop.f32.mrb[100].mxu1 }
 0x2f0   : > { %v1949_v58 = vpop.f32.mrb[101].mxu1 }
 0x2f1   : > { %v1950_v59 = vadd.f32 %v1949_v58, %v1948_v17  ;;  %v1951_v13 = vpop.f32.mrb[102].mxu1 }
 0x2f2   : > { %v1952_v15 = vpop.f32.mrb[103].mxu1 }
 0x2f3   : > { %v1624_v18 = vadd.f32 %v1950_v59, %v2878_v20  ;;  %v1953_v19 = vadd.f32 %v1952_v15, %v1951_v13 }
 0x2f5   : > { %1660 = vst [vmem:[%s2883_s24 + $0xf0] sm:$0xff] %v1624_v18  ;;  %v1627_v43 = vadd.f32 %v1953_v19, %v2878_v20 }
 0x2f7   : > { %1661 = vst [vmem:[%s2883_s24 + $0xf8] sm:$0xff] %v1627_v43 }
 0x2f8 PF: > { %s15_s18 = sadd.s32 1, %s2266_s18  }
 0x2f9   : > { %p12_p4 = scmp.ge.s32.totalorder %s15_s18, 6  }
 0x2fb   :  { %14 = sbr.rel (!%p12_p4) target bundleno = 1 (0x1), region = 70 }

</bundles_post_ra>
